<compile_context>
chip_gen: v7x
topology: tpu7x:2x2x1
jax: 0.10.0
libtpu: 0.0.40
codegen_flags: <defaults>
</compile_context>

<pallas_src>
import functools

import jax
import jax.numpy as jnp
from jax.experimental import pallas as pl
from jax.experimental.pallas import tpu as pltpu

_LANE = 128          # hidden dims padded to a multiple of this (lane width)
_SUBLANE = 8         # batch tiles padded to a multiple of this (sublane width)
_MAX_TILE_B = 512    # rows per batch tile (mem-bound sweet spot, ~85%+ roofline)
_MIN_SPLIT_B = 128   # only force a >=2-step grid if each tile keeps >=128 rows


def _round_up(n, m):
    return (n + m - 1) // m * m


def _ceil_div(a, b):
    return -(-a // b)


# ----------------------------- Pallas kernel ------------------------------ #

def bayesian_fnn4_kernel(x_ref, w_ref, b_ref, o_ref, *, num_layers, in_dim,
                         out_dim):
    """One batch tile through the 4-layer MLP.

    x_ref: (tile_b, in_dim)           unpadded activation tile
    w_ref: (num_layers, d_pad, d_pad) pre-sampled, zero-padded, (in,out) weights
    b_ref: (num_layers, 1, d_pad)     pre-sampled, zero-padded biases
    o_ref: (tile_b, out_dim)          unpadded output tile
    """
    # Layer 0: contract the unpadded input against the top in_dim rows of the
    # padded layer-0 weight (static slice; the padded rows are zero anyway).
    h = jnp.dot(x_ref[...], w_ref[0][:in_dim, :],
                preferred_element_type=jnp.float32)
    h = jnp.maximum(h + b_ref[0], 0.0)
    # Remaining hidden layers (ReLU) and final layer (no activation).
    for layer in range(1, num_layers):
        h = jnp.dot(h, w_ref[layer], preferred_element_type=jnp.float32)
        h = h + b_ref[layer]
        if layer < num_layers - 1:
            h = jnp.maximum(h, 0.0)
    # Store only the real output columns (masked vst; dense DMA to HBM).
    o_ref[...] = h[:, :out_dim].astype(o_ref.dtype)


# ------------------------------- wrapper ----------------------------------- #

@jax.jit
def bayesian_fnn4_forward(x, params):
    """x: (batch, input_dim) f32.
    params: list of 4 dicts with w_mu/w_rho/w_eps of shape (in, out) and
    b_mu/b_rho/b_eps of shape (1, out), all float32 (epsilon pre-sampled)."""
    batch, in_dim = x.shape
    num_layers = len(params)
    dims = [in_dim] + [p["w_mu"].shape[1] for p in params]
    out_dim = dims[-1]
    d_pad = _round_up(max(dims), _LANE)

    # Fold the reparameterization trick once, outside the kernel, using the
    # numerically-stable softplus (== torch.log1p(torch.exp(rho))).
    w_list, b_list = [], []
    for p in params:
        w = p["w_mu"] + jax.nn.softplus(p["w_rho"]) * p["w_eps"]   # (in, out)
        b = p["b_mu"] + jax.nn.softplus(p["b_rho"]) * p["b_eps"]   # (1, out)
        w_list.append(jnp.zeros((d_pad, d_pad), jnp.float32)
                      .at[: w.shape[0], : w.shape[1]].set(w))
        b_list.append(jnp.zeros((1, d_pad), jnp.float32)
                      .at[:, : b.shape[1]].set(b))
    w_packed = jnp.stack(w_list)   # (L, d_pad, d_pad) -> one resident VMEM block
    b_packed = jnp.stack(b_list)   # (L, 1, d_pad)

    # Batch tiling: big lane-dense tiles; force >= 2 grid steps for large
    # batches so the "parallel" axis actually feeds both v7x TensorCores.
    batch_sub = _round_up(batch, _SUBLANE)
    n_tiles = _ceil_div(batch_sub, _MAX_TILE_B)
    if n_tiles == 1 and batch_sub >= 2 * _MIN_SPLIT_B:
        n_tiles = 2
    tile_b = _round_up(_ceil_div(batch_sub, n_tiles), _SUBLANE)
    batch_pad = tile_b * n_tiles

    x = x.astype(jnp.float32)
    if batch_pad != batch:   # pad only the batch axis (rows of zeros)
        x_in = jnp.zeros((batch_pad, in_dim), jnp.float32).at[:batch].set(x)
    else:
        x_in = x

    out = pl.pallas_call(
        functools.partial(bayesian_fnn4_kernel, num_layers=num_layers,
                          in_dim=in_dim, out_dim=out_dim),
        out_shape=jax.ShapeDtypeStruct((batch_pad, out_dim), jnp.float32),
        grid_spec=pltpu.PrefetchScalarGridSpec(
            num_scalar_prefetch=0,
            grid=(n_tiles,),
            in_specs=[
                # activation tile: marches over the batch axis (unpadded lanes)
                pl.BlockSpec((tile_b, in_dim), lambda i: (i, 0)),
                # packed weights / biases: same block every step -> VMEM resident
                pl.BlockSpec((num_layers, d_pad, d_pad), lambda i: (0, 0, 0)),
                pl.BlockSpec((num_layers, 1, d_pad), lambda i: (0, 0, 0)),
            ],
            out_specs=pl.BlockSpec((tile_b, out_dim), lambda i: (i, 0)),
        ),
        compiler_params=pltpu.CompilerParams(
            dimension_semantics=("parallel",),   # shard batch tiles across TCs (v7x)
        ),
    )(x_in, w_packed, b_packed)

    return out[:batch]


# ----------------------- synthetic params & reference ---------------------- #

def make_bayesian_linear_params(key, in_features, out_features):
    """Mirrors BayesianLinear.__init__ with pre-sampled epsilon noise.
    Weights stored transposed as (in, out); biases as (1, out)."""
    k_wmu, k_wrho, k_weps, k_bmu, k_brho, k_beps = jax.random.split(key, 6)
    w_mu = jax.random.uniform(k_wmu, (out_features, in_features),
                              minval=-0.2, maxval=0.2, dtype=jnp.float32)
    w_rho = jax.random.uniform(k_wrho, (out_features, in_features),
                               minval=-5.0, maxval=-4.0, dtype=jnp.float32)
    w_eps = jax.random.normal(k_weps, (out_features, in_features),
                              dtype=jnp.float32)
    b_mu = jax.random.uniform(k_bmu, (out_features,),
                              minval=-0.2, maxval=0.2, dtype=jnp.float32)
    b_rho = jax.random.uniform(k_brho, (out_features,),
                               minval=-5.0, maxval=-4.0, dtype=jnp.float32)
    b_eps = jax.random.normal(k_beps, (out_features,), dtype=jnp.float32)
    return {
        "w_mu": w_mu.T, "w_rho": w_rho.T, "w_eps": w_eps.T,                       # (in, out)
        "b_mu": b_mu[None, :], "b_rho": b_rho[None, :], "b_eps": b_eps[None, :],  # (1, out)
    }


def reference_forward(x, params):
    """Pure-JAX reference of the same forward pass (same epsilon samples)."""
    h = x
    for i, p in enumerate(params):
        w = p["w_mu"] + jax.nn.softplus(p["w_rho"]) * p["w_eps"]
        b = p["b_mu"] + jax.nn.softplus(p["b_rho"]) * p["b_eps"]
        h = h @ w + b
        if i < len(params) - 1:
            h = jnp.maximum(h, 0.0)
    return h


if __name__ == "__main__":
    key = jax.random.PRNGKey(0)

    batch = 8
    input_dim = 16
    hidden_dim = 32
    output_dim = 8

    k_x, k1, k2, k3, k4 = jax.random.split(key, 5)
    x = jax.random.normal(k_x, (batch, input_dim), dtype=jnp.float32)

    params = [
        make_bayesian_linear_params(k1, input_dim, hidden_dim),
        make_bayesian_linear_params(k2, hidden_dim, hidden_dim),
        make_bayesian_linear_params(k3, hidden_dim, hidden_dim),
        make_bayesian_linear_params(k4, hidden_dim, output_dim),
    ]

    out = jax.block_until_ready(bayesian_fnn4_forward(x, params))

    ref = reference_forward(x, params)
    assert out.shape == (batch, output_dim), out.shape
    assert jnp.allclose(out, ref, atol=1e-4, rtol=1e-4), "mismatch vs reference"

    print("KERNEL_OK")
</pallas_src>

<mosaic_0001>
module attributes {stable_mosaic.version = 11 : i64} {
  func.func @bayesian_fnn4_kernel(%arg0: i32, %arg1: memref<8x16xf32, #tpu.memory_space<vmem>>, %arg2: memref<4x128x128xf32, #tpu.memory_space<vmem>>, %arg3: memref<4x1x128xf32, #tpu.memory_space<vmem>>, %arg4: memref<8x8xf32, #tpu.memory_space<vmem>>) attributes {dimension_semantics = [#tpu.dimension_semantics<parallel>], iteration_bounds = array<i64: 1>, scalar_prefetch = 0 : i64, scratch_operands = 0 : i64, tpu.core_type = #tpu.core_type<tc>, window_params = [{transform_indices = @transform_0, window_bounds = array<i64: 8, 16>}, {pipeline_mode = #tpu.pipeline_mode<synchronous>, transform_indices = @transform_1, window_bounds = array<i64: 4, 128, 128>}, {pipeline_mode = #tpu.pipeline_mode<synchronous>, transform_indices = @transform_2, window_bounds = array<i64: 4, 1, 128>}, {transform_indices = @transform_3, window_bounds = array<i64: 8, 8>}]} {
    %c0 = arith.constant 0 : index
    %c0_0 = arith.constant 0 : index
    %0 = vector.load %arg1[%c0, %c0_0] : memref<8x16xf32, #tpu.memory_space<vmem>>, vector<8x16xf32>
    %c0_1 = arith.constant 0 : index
    %c0_2 = arith.constant 0 : index
    %c0_3 = arith.constant 0 : index
    %1 = vector.load %arg2[%c0_1, %c0_2, %c0_3] : memref<4x128x128xf32, #tpu.memory_space<vmem>>, vector<1x128x128xf32>
    %2 = vector.shape_cast %1 : vector<1x128x128xf32> to vector<128x128xf32>
    %3 = vector.extract_strided_slice %2 {offsets = [0, 0], sizes = [16, 128], strides = [1, 1]} : vector<128x128xf32> to vector<16x128xf32>
    %cst = arith.constant dense<0.000000e+00> : vector<8x128xf32>
    %4 = tpu.matmul %0, %3, %cst {dimension_numbers = #tpu.dot_dimension_numbers<[1], [0], [0], [1], [0, 0, 1, 1], [], []>} : vector<8x16xf32>, vector<16x128xf32>, vector<8x128xf32> -> vector<8x128xf32>
    %c0_4 = arith.constant 0 : index
    %c0_5 = arith.constant 0 : index
    %c0_6 = arith.constant 0 : index
    %5 = vector.load %arg3[%c0_4, %c0_5, %c0_6] : memref<4x1x128xf32, #tpu.memory_space<vmem>>, vector<1x1x128xf32>
    %6 = vector.shape_cast %5 : vector<1x1x128xf32> to vector<1x128xf32>
    %7 = vector.broadcast %6 : vector<1x128xf32> to vector<8x128xf32>
    %8 = arith.addf %4, %7 : vector<8x128xf32>
    %cst_7 = arith.constant 0.000000e+00 : f32
    %9 = vector.broadcast %cst_7 : f32 to vector<8x128xf32>
    %10 = arith.maximumf %8, %9 : vector<8x128xf32>
    %c1 = arith.constant 1 : index
    %c0_8 = arith.constant 0 : index
    %c0_9 = arith.constant 0 : index
    %11 = vector.load %arg2[%c1, %c0_8, %c0_9] : memref<4x128x128xf32, #tpu.memory_space<vmem>>, vector<1x128x128xf32>
    %12 = vector.shape_cast %11 : vector<1x128x128xf32> to vector<128x128xf32>
    %cst_10 = arith.constant dense<0.000000e+00> : vector<8x128xf32>
    %13 = tpu.matmul %10, %12, %cst_10 {dimension_numbers = #tpu.dot_dimension_numbers<[1], [0], [0], [1], [0, 0, 1, 1], [], []>} : vector<8x128xf32>, vector<128x128xf32>, vector<8x128xf32> -> vector<8x128xf32>
    %c1_11 = arith.constant 1 : index
    %c0_12 = arith.constant 0 : index
    %c0_13 = arith.constant 0 : index
    %14 = vector.load %arg3[%c1_11, %c0_12, %c0_13] : memref<4x1x128xf32, #tpu.memory_space<vmem>>, vector<1x1x128xf32>
    %15 = vector.shape_cast %14 : vector<1x1x128xf32> to vector<1x128xf32>
    %16 = vector.broadcast %15 : vector<1x128xf32> to vector<8x128xf32>
    %17 = arith.addf %13, %16 : vector<8x128xf32>
    %cst_14 = arith.constant 0.000000e+00 : f32
    %18 = vector.broadcast %cst_14 : f32 to vector<8x128xf32>
    %19 = arith.maximumf %17, %18 : vector<8x128xf32>
    %c2 = arith.constant 2 : index
    %c0_15 = arith.constant 0 : index
    %c0_16 = arith.constant 0 : index
    %20 = vector.load %arg2[%c2, %c0_15, %c0_16] : memref<4x128x128xf32, #tpu.memory_space<vmem>>, vector<1x128x128xf32>
    %21 = vector.shape_cast %20 : vector<1x128x128xf32> to vector<128x128xf32>
    %cst_17 = arith.constant dense<0.000000e+00> : vector<8x128xf32>
    %22 = tpu.matmul %19, %21, %cst_17 {dimension_numbers = #tpu.dot_dimension_numbers<[1], [0], [0], [1], [0, 0, 1, 1], [], []>} : vector<8x128xf32>, vector<128x128xf32>, vector<8x128xf32> -> vector<8x128xf32>
    %c2_18 = arith.constant 2 : index
    %c0_19 = arith.constant 0 : index
    %c0_20 = arith.constant 0 : index
    %23 = vector.load %arg3[%c2_18, %c0_19, %c0_20] : memref<4x1x128xf32, #tpu.memory_space<vmem>>, vector<1x1x128xf32>
    %24 = vector.shape_cast %23 : vector<1x1x128xf32> to vector<1x128xf32>
    %25 = vector.broadcast %24 : vector<1x128xf32> to vector<8x128xf32>
    %26 = arith.addf %22, %25 : vector<8x128xf32>
    %cst_21 = arith.constant 0.000000e+00 : f32
    %27 = vector.broadcast %cst_21 : f32 to vector<8x128xf32>
    %28 = arith.maximumf %26, %27 : vector<8x128xf32>
    %c3 = arith.constant 3 : index
    %c0_22 = arith.constant 0 : index
    %c0_23 = arith.constant 0 : index
    %29 = vector.load %arg2[%c3, %c0_22, %c0_23] : memref<4x128x128xf32, #tpu.memory_space<vmem>>, vector<1x128x128xf32>
    %30 = vector.shape_cast %29 : vector<1x128x128xf32> to vector<128x128xf32>
    %cst_24 = arith.constant dense<0.000000e+00> : vector<8x128xf32>
    %31 = tpu.matmul %28, %30, %cst_24 {dimension_numbers = #tpu.dot_dimension_numbers<[1], [0], [0], [1], [0, 0, 1, 1], [], []>} : vector<8x128xf32>, vector<128x128xf32>, vector<8x128xf32> -> vector<8x128xf32>
    %c3_25 = arith.constant 3 : index
    %c0_26 = arith.constant 0 : index
    %c0_27 = arith.constant 0 : index
    %32 = vector.load %arg3[%c3_25, %c0_26, %c0_27] : memref<4x1x128xf32, #tpu.memory_space<vmem>>, vector<1x1x128xf32>
    %33 = vector.shape_cast %32 : vector<1x1x128xf32> to vector<1x128xf32>
    %34 = vector.broadcast %33 : vector<1x128xf32> to vector<8x128xf32>
    %35 = arith.addf %31, %34 : vector<8x128xf32>
    %36 = vector.extract_strided_slice %35 {offsets = [0, 0], sizes = [8, 8], strides = [1, 1]} : vector<8x128xf32> to vector<8x8xf32>
    %c0_28 = arith.constant 0 : index
    %c0_29 = arith.constant 0 : index
    %37 = vector.load %arg4[%c0_28, %c0_29] : memref<8x8xf32, #tpu.memory_space<vmem>>, vector<8x8xf32>
    tpu.vector_store %arg4[%c0_28, %c0_29], %36 {strides = array<i32>} : memref<8x8xf32, #tpu.memory_space<vmem>>, vector<8x8xf32>,
    return
  }
  func.func @transform_0(%arg0: i32) -> (i32, i32) {
    %c0_i32 = arith.constant 0 : i32
    %c0_i32_0 = arith.constant 0 : i32
    return %arg0, %c0_i32 : i32, i32
  }
  func.func @transform_1(%arg0: i32) -> (i32, i32, i32) {
    %c0_i32 = arith.constant 0 : i32
    %c0_i32_0 = arith.constant 0 : i32
    %c0_i32_1 = arith.constant 0 : i32
    %c0_i32_2 = arith.constant 0 : i32
    return %c0_i32, %c0_i32_0, %c0_i32_1 : i32, i32, i32
  }
  func.func @transform_2(%arg0: i32) -> (i32, i32, i32) {
    %c0_i32 = arith.constant 0 : i32
    %c0_i32_0 = arith.constant 0 : i32
    %c0_i32_1 = arith.constant 0 : i32
    %c0_i32_2 = arith.constant 0 : i32
    return %c0_i32, %c0_i32_0, %c0_i32_1 : i32, i32, i32
  }
  func.func @transform_3(%arg0: i32) -> (i32, i32) {
    %c0_i32 = arith.constant 0 : i32
    %c0_i32_0 = arith.constant 0 : i32
    return %arg0, %c0_i32 : i32, i32
  }
}

</mosaic_0001>

<bundles_post_ra>
// kernel: bayesian_fnn4_forward.1
= control target key start
LH: loop header
LB: loop body
LE: loop exit
PB: predicated region body
PF: predicated region fallthrough
CT: control target
= control target key end

     0   :  { %v728_v2 = vmov 0.0|0.0   ;;  %vm729_vm0 = vmmov 0   ;;  %v730_v4 = vmov 0.0   ;;  %vm25_vm1 = vcmask 130048   ;;  %s962_s0 = inlined_call_operand.vmem [shape: f32[8,16], index: 0, kind: input, shape index: {}]   ;;  %s963_s1 = inlined_call_operand.vmem [shape: f32[4,128,128], index: 1, kind: input, shape index: {}]   ;;  %s964_s2 = inlined_call_operand.vmem [shape: f32[4,1,128], index: 2, kind: input, shape index: {}]   ;;  %s965_s3 = inlined_call_operand.hbm [shape: f32[8,8], index: 3, kind: output, shape index: {}]  }
   0x1   :  { %v16_v0 = vld [vmem:[%s963_s1] sm:$0xff]  ;;  %v17_v1 = vld [vmem:[%s963_s1 + $0x8] sm:$0xff]  ;;  %625 = vmatprep.subr.bf16.mxu0 %v728_v2  ;;  %517 = vmatprep.mubr.msk.f32.mxu0 %vm729_vm0, %v730_v4  ;;  %v407_v7 = vld [vmem:[%s963_s1 + $0x90] sm:$0xff] }
   0x2   :  { %v626_v3 = vpack.c.bf16 %v17_v1, %v16_v0  ;;  %v405_v5 = vld [vmem:[%s963_s1 + $0x80] sm:$0xff]  ;;  %v406_v6 = vld [vmem:[%s963_s1 + $0x88] sm:$0xff]  ;;  %628 = vmatprep.subr.bf16.mxu1 %v728_v2  ;;  %v408_v9 = vld [vmem:[%s963_s1 + $0x98] sm:$0xff]  ;;  %552 = vmatprep.mubr.msk.f32.mxu1 %vm729_vm0, %v730_v4 }
   0x3   :  { %v629_v8 = vpack.c.bf16 %v406_v6, %v405_v5  ;;  %v15_v10 = vld [vmem:[%s962_s0] sm:$0xff]  ;;  %v632_v11 = vpack.c.bf16 %v408_v9, %v407_v7  ;;  %v410_v13 = vld [vmem:[%s963_s1 + $0xa8] sm:$0xff] }
   0x4   :  { %627 = vmatpush3.bf16.msra.mxu0 %v626_v3  ;;  %v409_v12 = vld [vmem:[%s963_s1 + $0xa0] sm:$0xff] }
   0x5   :  { %630 = vmatpush3.bf16.msra.mxu1 %v629_v8  ;;  %652 = vmatprep.subr.bf16.mxu0 %v728_v2 }
   0x6   :  { %631 = vmatprep.subr.bf16.mxu1 %v728_v2 }
   0x7   :  { %518 = vmatmul.mubr.msk.f32.vlgmr.msra.gmra.mrb[0].mxu0 %vm25_vm1, %v15_v10 }
   0x8   :  { %8 = vsyncpa [#allocation3], 0  ;;  %587 = vmatprep.mubr.msk.f32.mxu0 %vm729_vm0, %v730_v4  ;;  %v635_v14 = vpack.c.bf16 %v410_v13, %v409_v12  ;;  %v411_v15 = vld [vmem:[%s963_s1 + $0xb0] sm:$0xff]  ;;  %v412_v16 = vld [vmem:[%s963_s1 + $0xb8] sm:$0xff]  ;;  %s731_s10 = smov [#allocation2]   ;;  %vm387_vm2 = vcmask 64512  }
   0x9   :  { %633 = vmatpush3.bf16.msra.mxu1 %v632_v11  ;;  %v638_v17 = vpack.c.bf16 %v412_v16, %v411_v15  ;;  %v413_v18 = vld [vmem:[%s963_s1 + $0xc0] sm:$0xff]  ;;  %v414_v19 = vld [vmem:[%s963_s1 + $0xc8] sm:$0xff]  ;;  %v415_v21 = vld [vmem:[%s963_s1 + $0xd0] sm:$0xff]  ;;  %s395_s11 = sshll.u32 %s731_s10, 4  ;;  %s396_s11 = int_to_ptr.vmem [resolvable:$true] %s395_s11 }
   0xa   :  { %634 = vmatprep.subr.bf16.mxu1 %v728_v2  ;;  %v641_v20 = vpack.c.bf16 %v414_v19, %v413_v18  ;;  %v416_v22 = vld [vmem:[%s963_s1 + $0xd8] sm:$0xff]  ;;  %v417_v24 = vld [vmem:[%s963_s1 + $0xe0] sm:$0xff]  ;;  %v418_v25 = vld [vmem:[%s963_s1 + $0xe8] sm:$0xff]  ;;  %p709_p1 = scmp.lt.s32.totalorder %s396_s11, %s396_s11 }
   0xb   :  { %v644_v23 = vpack.c.bf16 %v416_v22, %v415_v21  ;;  %v647_v26 = vpack.c.bf16 %v418_v25, %v417_v24  ;;  %v419_v27 = vld [vmem:[%s963_s1 + $0xf0] sm:$0xff]  ;;  %v420_v28 = vld [vmem:[%s963_s1 + $0xf8] sm:$0xff]  ;;  %v423_v30 = vld [vmem:[%s963_s1 + $0x100] sm:$0xff] }
   0xc   :  { %v650_v29 = vpack.c.bf16 %v420_v28, %v419_v27  ;;  %v424_v31 = vld [vmem:[%s963_s1 + $0x108] sm:$0xff]  ;;  %v425_v32 = vld [vmem:[%s963_s1 + $0x110] sm:$0xff]  ;;  %v426_v34 = vld [vmem:[%s963_s1 + $0x118] sm:$0xff] }
   0xd   :  { %636 = vmatpush3.bf16.msra.mxu1 %v635_v14  ;;  %v653_v33 = vpack.c.bf16 %v424_v31, %v423_v30  ;;  %v656_v35 = vpack.c.bf16 %v426_v34, %v425_v32  ;;  %v427_v36 = vld [vmem:[%s963_s1 + $0x120] sm:$0xff]  ;;  %v428_v37 = vld [vmem:[%s963_s1 + $0x128] sm:$0xff]  ;;  %v429_v39 = vld [vmem:[%s963_s1 + $0x130] sm:$0xff] }
   0xe   :  { %637 = vmatprep.subr.bf16.mxu1 %v728_v2  ;;  %v659_v38 = vpack.c.bf16 %v428_v37, %v427_v36  ;;  %v430_v40 = vld [vmem:[%s963_s1 + $0x138] sm:$0xff]  ;;  %v431_v42 = vld [vmem:[%s963_s1 + $0x140] sm:$0xff]  ;;  %v432_v43 = vld [vmem:[%s963_s1 + $0x148] sm:$0xff] }
   0xf   :  { %654 = vmatpush3.bf16.msra.mxu0 %v653_v33  ;;  %v662_v41 = vpack.c.bf16 %v430_v40, %v429_v39  ;;  %v665_v44 = vpack.c.bf16 %v432_v43, %v431_v42  ;;  %v433_v45 = vld [vmem:[%s963_s1 + $0x150] sm:$0xff]  ;;  %v434_v46 = vld [vmem:[%s963_s1 + $0x158] sm:$0xff]  ;;  %v435_v48 = vld [vmem:[%s963_s1 + $0x160] sm:$0xff] }
  0x10   :  { %655 = vmatprep.subr.bf16.mxu0 %v728_v2  ;;  %v668_v47 = vpack.c.bf16 %v434_v46, %v433_v45  ;;  %v436_v49 = vld [vmem:[%s963_s1 + $0x168] sm:$0xff]  ;;  %v403_v51 = vld [vmem:[%s964_s2] ss:$0 sm:$0xff]  ;;  %v437_v56 = vld [vmem:[%s963_s1 + $0x170] sm:$0xff] }
  0x11   :  { %639 = vmatpush3.bf16.msra.mxu1 %v638_v17  ;;  %v671_v50 = vpack.c.bf16 %v436_v49, %v435_v48  ;;  %v438_v57 = vld [vmem:[%s963_s1 + $0x178] sm:$0xff]  ;;  %v441_v59 = vld [vmem:[%s963_s1 + $0x180] sm:$0xff]  ;;  %v442_v60 = vld [vmem:[%s963_s1 + $0x188] sm:$0xff] }
  0x12   :  { %640 = vmatprep.subr.bf16.mxu1 %v728_v2  ;;  %v674_v58 = vpack.c.bf16 %v438_v57, %v437_v56  ;;  %v443_v61 = vld [vmem:[%s963_s1 + $0x190] sm:$0xff]  ;;  %v677_v62 = vpack.c.bf16 %v442_v60, %v441_v59  ;;  %v444_v63 = vld [vmem:[%s963_s1 + $0x198] sm:$0xff]  ;;  %v445_v1 = vld [vmem:[%s963_s1 + $0x1a0] sm:$0xff] }
  0x13   :  { %657 = vmatpush3.bf16.msra.mxu0 %v656_v35  ;;  %v680_v0 = vpack.c.bf16 %v444_v63, %v443_v61  ;;  %v446_v3 = vld [vmem:[%s963_s1 + $0x1a8] sm:$0xff]  ;;  %v447_v5 = vld [vmem:[%s963_s1 + $0x1b0] sm:$0xff]  ;;  %v448_v6 = vld [vmem:[%s963_s1 + $0x1b8] sm:$0xff] }
  0x14   :  { %658 = vmatprep.subr.bf16.mxu0 %v728_v2  ;;  %v686_v7 = vpack.c.bf16 %v448_v6, %v447_v5  ;;  %v449_v8 = vld [vmem:[%s963_s1 + $0x1c0] sm:$0xff]  ;;  %v450_v9 = vld [vmem:[%s963_s1 + $0x1c8] sm:$0xff]  ;;  %v451_v11 = vld [vmem:[%s963_s1 + $0x1d0] sm:$0xff] }
  0x15   :  { %642 = vmatpush3.bf16.msra.mxu1 %v641_v20  ;;  %v689_v10 = vpack.c.bf16 %v450_v9, %v449_v8  ;;  %v452_v12 = vld [vmem:[%s963_s1 + $0x1d8] sm:$0xff]  ;;  %v453_v14 = vld [vmem:[%s963_s1 + $0x1e0] sm:$0xff]  ;;  %v454_v15 = vld [vmem:[%s963_s1 + $0x1e8] sm:$0xff] }
  0x16   :  { %643 = vmatprep.subr.bf16.mxu1 %v728_v2  ;;  %v692_v13 = vpack.c.bf16 %v452_v12, %v451_v11  ;;  %v695_v16 = vpack.c.bf16 %v454_v15, %v453_v14  ;;  %v422_v17 = vld [vmem:[%s964_s2 + $0x1] ss:$0 sm:$0xff]  ;;  %v455_v22 = vld [vmem:[%s963_s1 + $0x1f0] sm:$0xff] }
  0x17   :  { %660 = vmatpush3.bf16.msra.mxu0 %v659_v38 }
  0x18   :  { %661 = vmatprep.subr.bf16.mxu0 %v728_v2 }
  0x19   :  { %645 = vmatpush3.bf16.msra.mxu1 %v644_v23  ;;  %v456_v23 = vld [vmem:[%s963_s1 + $0x1f8] sm:$0xff]  ;;  %s704_s1 = scalar_lea.vmem %s396_s11, 128 }
  0x1a   :  { %646 = vmatprep.subr.bf16.mxu1 %v728_v2  ;;  %v698_v24 = vpack.c.bf16 %v456_v23, %v455_v22  ;;  %p705_p0 = scmp.ne.s32.totalorder %s396_s11, %s704_s1  ;;  %p710_p2 = scmp.lt.s32.totalorder %s704_s1, %s704_s1 }
  0x1b   :  { %663 = vmatpush3.bf16.msra.mxu0 %v662_v41 }
  0x1c   :  { %664 = vmatprep.subr.bf16.mxu0 %v728_v2  ;;  %p711_p3 = por %p710_p2, %p709_p1 }
  0x1d   :  { %648 = vmatpush3.bf16.msra.mxu1 %v647_v26 }
  0x1e   :  { %649 = vmatprep.subr.bf16.mxu1 %v728_v2  ;;  %p712_p4 = pnand %p711_p3, %p705_p0 }
  0x1f   :  { %666 = vmatpush3.bf16.msra.mxu0 %v665_v44 }
  0x20   :  { %667 = vmatprep.subr.bf16.mxu0 %v728_v2 }
  0x21   :  { %651 = vmatpush3.bf16.msra.mxu1 %v650_v29  ;;  %v458_v29 = vld [vmem:[%s964_s2 + $0x3] ss:$0 sm:$0xff] }
  0x22   :  { %676 = vmatprep.subr.bf16.mxu1 %v728_v2 }
  0x23   :  { %669 = vmatpush3.bf16.msra.mxu0 %v668_v47 }
  0x24   :  { %670 = vmatprep.subr.bf16.mxu0 %v728_v2 }
  0x27   :  { %672 = vmatpush3.bf16.msra.mxu0 %v671_v50 }
  0x28   :  { %673 = vmatprep.subr.bf16.mxu0 %v728_v2 }
  0x2b   :  { %675 = vmatpush3.bf16.msra.mxu0 %v674_v58 }
  0xda   :  { %v95_v52 = vpop.f32.mrb[0].mxu0 }
  0xdb   :  { %v96_v53 = vadd.f32 %v403_v51, %v95_v52  ;;  %v519_v54 = vpop.f32.mrb[1].mxu0 }
  0xdd   :  { %v99_v55 = vmax.f32 %v96_v53, 0.0 }
  0xdf   :  { %553 = vmatmul.mubr.f32.vlgmr.msra.gmra.mrb[0].mxu1 %v99_v55 }
  0xe0   :  { %622 = vmatprep.mubr.msk.f32.mxu1 %vm729_vm0, %v730_v4  ;;  %678 = vmatpush3.bf16.msra.mxu1 %v677_v62  ;;  %v683_v4 = vpack.c.bf16 %v446_v3, %v445_v1 }
  0xe1   :  { %679 = vmatprep.subr.bf16.mxu1 %v728_v2 }
  0xe4   :  { %681 = vmatpush3.bf16.msra.mxu1 %v680_v0 }
  0xe5   :  { %682 = vmatprep.subr.bf16.mxu1 %v728_v2 }
  0xe8   :  { %684 = vmatpush3.bf16.msra.mxu1 %v683_v4 }
  0xe9   :  { %685 = vmatprep.subr.bf16.mxu1 %v728_v2 }
  0xec   :  { %687 = vmatpush3.bf16.msra.mxu1 %v686_v7 }
  0xed   :  { %688 = vmatprep.subr.bf16.mxu1 %v728_v2 }
  0xf0   :  { %690 = vmatpush3.bf16.msra.mxu1 %v689_v10 }
  0xf1   :  { %691 = vmatprep.subr.bf16.mxu1 %v728_v2 }
  0xf4   :  { %693 = vmatpush3.bf16.msra.mxu1 %v692_v13 }
  0xf5   :  { %694 = vmatprep.subr.bf16.mxu1 %v728_v2 }
  0xf8   :  { %696 = vmatpush3.bf16.msra.mxu1 %v695_v16 }
  0xf9   :  { %697 = vmatprep.subr.bf16.mxu1 %v728_v2  ;;  %v440_v2 = vld [vmem:[%s964_s2 + $0x2] ss:$0 sm:$0xff] }
  0xfc   :  { %699 = vmatpush3.bf16.msra.mxu1 %v698_v24 }
 0x1b2   :  { %v191_v18 = vpop.f32.mrb[0].mxu1 }
 0x1b3   :  { %v192_v19 = vadd.f32 %v422_v17, %v191_v18  ;;  %v554_v20 = vpop.f32.mrb[1].mxu1 }
 0x1b5   :  { %v195_v21 = vmax.f32 %v192_v19, 0.0 }
 0x1b7   :  { %588 = vmatmul.mubr.f32.vlgmr.msra.gmra.mrb[2].mxu0 %v195_v21 }
 0x28a   :  { %v287_v25 = vpop.f32.mrb[2].mxu0 }
 0x28b   :  { %v288_v26 = vadd.f32 %v440_v2, %v287_v25  ;;  %v589_v27 = vpop.f32.mrb[3].mxu0 }
 0x28d   :  { %v291_v28 = vmax.f32 %v288_v26, 0.0 }
 0x28f   :  { %623 = vmatmul.mubr.f32.vlgmr.msra.gmra.mrb[2].mxu1 %v291_v28 }
 0x362   :  { %v383_v30 = vpop.f32.mrb[2].mxu1 }
 0x363   :  { %v384_v31 = vadd.f32 %v458_v29, %v383_v30  ;;  %v624_v32 = vpop.f32.mrb[3].mxu1 }
 0x365   :  { %388 = vst.msk [vmem:[#allocation2] sm:$0xff] %vm387_vm2, %v384_v31 }
 0x366   :  { %715 = shalt.err (!%p712_p4)
}
 0x367   :  { %s716_s14 = scalar_lea.hbm %s965_s3, 128 }
 0x368   :  { %p717_p5 = scmp.ne.s32.totalorder %s965_s3, %s716_s14  ;;  %p720_p6 = scmp.lt.u32.totalorder %s716_s14, %s965_s3 }
 0x36a   :  { %p722_p7 = pnand %p720_p6, %p717_p5 }
 0x36c   :  { %725 = shalt.err (!%p722_p7)
}
 0x36d   :  { %398 = dma.vmem_to_hbm [thread:$0]  %s396_s11, 128, %s965_s3, [#allocation3]  }
 0x36e   :  { %726 = dma.done.wait [#allocation3], 128  }
 0x36f   :  { %727 = vsyncadd [#allocation3], 4294967168 }
 0x370   :  { %402 = vsyncpa [#allocation3], 1 }

</bundles_post_ra>
